<compile_context>
chip_gen: v5e
topology: v5e:2x2
jax: 0.10.0
libtpu: 0.0.40
codegen_flags: <defaults>
</compile_context>

<pallas_src>
import numpy as np
import jax
import jax.numpy as jnp
from jax import lax
from jax.experimental import pallas as pl
from jax.experimental.pallas import tpu as pltpu

UPPER_BOUND = 1.0
NORM = False
_LANE = 128
_MAX_TILE_LANES = 32768                  # cap on spatial tile width (lanes)
_VMEM_TILE_BUDGET = 20 * 1024 * 1024     # bytes: double-buffered inputs + working set
_VMEM_LIMIT = 40 * 1024 * 1024           # scoped VMEM limit handed to Mosaic


def _round_up(x, m):
    return ((x + m - 1) // m) * m


def _pick_tile_lanes(n, c, hw, logits_itemsize, target_itemsize, max_tile_lanes):
    """Largest 128-multiple tile keeping double-buffered inputs + temps within budget."""
    cpad = _round_up(c, 8)          # logits channels padded to sublane multiple
    cpad1 = _round_up(c + 1, 8)     # target channels padded to sublane multiple
    npad = _round_up(n, 8)
    per_lane = (2 * n * (cpad * logits_itemsize + cpad1 * target_itemsize)  # 2x dbl-buffer
                + 10 * npad * 4)                                            # (N,T) f32 temps
    lanes = max(_LANE, (_VMEM_TILE_BUDGET // per_lane) // _LANE * _LANE)
    lanes = min(lanes, max_tile_lanes)
    if hw <= lanes:
        return hw            # single tile spanning the full extent (no tail masking)
    return lanes


def _make_kernel(n, c, hw, hw_t):
    needs_mask = (hw % hw_t) != 0

    def kernel(logits_ref, target_ref, s_ref, hist_ref, ign_ref):
        # logits_ref: (N, C, T) native dtype     target_ref: (N, C+1, T) native dtype
        # s_ref:    (1, N, C)   per-image/per-class loss partials (class weights applied later)
        # hist_ref: (1, N, C+1) per-image/per-class pixel counts
        # ign_ref:  (1, N, 1)   per-image ignored-pixel counts
        if needs_mask:
            t = pl.program_id(0)
            pos = t * hw_t + lax.broadcasted_iota(jnp.int32, (1, hw_t), 1)
            in_range = pos < hw                                      # (1, T) bool
        else:
            in_range = None

        def read_x(ci):      # one logits channel, sanitized on OOB tail lanes
            x = logits_ref[:, ci, :].astype(jnp.float32)
            return x if in_range is None else jnp.where(in_range, x, 0.0)

        def read_m(ci):      # one target channel, sanitized on OOB tail lanes
            m = target_ref[:, ci, :].astype(jnp.float32)
            return m if in_range is None else jnp.where(in_range, m, 0.0)

        # ---- pass 1: per-pixel max over logit channels (numerically stable exp) ------
        xmax = read_x(0)
        for ci in range(1, c):
            xmax = jnp.maximum(xmax, read_x(ci))

        # ---- pass 2: softmax sums, border weights, per-class histogram ---------------
        sum_e = jnp.zeros((n, hw_t), jnp.float32)
        sum_em = jnp.zeros((n, hw_t), jnp.float32)
        bw = jnp.zeros((n, hw_t), jnp.float32)
        hist_cols = []
        for ci in range(c):
            e_ci = jnp.exp(read_x(ci) - xmax)
            m_ci = read_m(ci)
            sum_e = sum_e + e_ci
            sum_em = sum_em + e_ci * m_ci
            bw = bw + m_ci
            hist_cols.append(jnp.sum(m_ci, axis=-1, keepdims=True))      # (N, 1)
        hist_cols.append(jnp.sum(read_m(c), axis=-1, keepdims=True))     # extra/border channel
        hist_ref[...] = jnp.concatenate(hist_cols, axis=-1)[None]        # (1, N, C+1)

        ignore = bw == 0.0                          # (N, T); True on OOB tail lanes too
        valid = 1.0 - ignore.astype(jnp.float32)    # 0 on ignored and OOB pixels
        ign = ignore.astype(jnp.float32)
        if in_range is not None:
            ign = jnp.where(in_range, ign, 0.0)     # don't count OOB tail lanes as ignored
        ign_ref[...] = jnp.sum(ign, axis=-1, keepdims=True)[None]        # (1, N, 1)

        # The PyTorch module broadcasts (-1/border_weights) of shape (N,H,W) against each
        # image's (1,H,W) inner term, so per pixel it collapses to sum_n 1/bw[n]
        # (a quirk of the original module, reproduced faithfully).
        inv_border = jnp.sum(1.0 / jnp.where(ignore, 1.0, bw), axis=0, keepdims=True)
        # relaxed softmax: sum_c m_c*log(max(soft_c, m_c*p)) == log(p)*sum_c m_c,
        # with p = sum_{c: m_c=1} soft_c  -> only two logs per pixel.
        logp = jnp.log(jnp.where(ignore, 1.0, sum_em)) - jnp.log(sum_e)   # (N, T)
        factor = (-inv_border) * logp * valid                             # (N, T)

        # ---- pass 3: per-image, per-class loss partials -------------------------------
        s_cols = []
        for ci in range(c):
            s_cols.append(jnp.sum(factor * read_m(ci), axis=-1, keepdims=True))
        s_ref[...] = jnp.concatenate(s_cols, axis=-1)[None]               # (1, N, C)

    return kernel


def img_wt_loss_soft_nll(logits, target, *, upper_bound=UPPER_BOUND, norm=NORM,
                         max_tile_lanes=_MAX_TILE_LANES):
    """logits: (N, C, H, W) float (f32 or bf16); target: (N, C+1, H, W) 0/1 multi-hot."""
    n, c, h, w = logits.shape
    assert target.shape == (n, c + 1, h, w)
    hw = h * w

    logits3 = logits.reshape(n, c, hw)            # native dtype, bitcast reshape only
    target3 = target.reshape(n, c + 1, hw)        # native dtype, bitcast reshape only

    hw_t = _pick_tile_lanes(n, c, hw, logits3.dtype.itemsize,
                            target3.dtype.itemsize, max_tile_lanes)
    num_tiles = pl.cdiv(hw, hw_t)

    out_bytes = num_tiles * n * (2 * c + 2) * 4
    cost = pl.CostEstimate(
        flops=int(n * hw * (8 * c + 16)),
        transcendentals=int(n * hw * (c + 3)),
        bytes_accessed=int(logits3.size * logits3.dtype.itemsize
                           + target3.size * target3.dtype.itemsize + out_bytes))

    s_part, hist_part, ign_part = pl.pallas_call(
        _make_kernel(n, c, hw, hw_t),
        out_shape=(jax.ShapeDtypeStruct((num_tiles, n, c), jnp.float32),
                   jax.ShapeDtypeStruct((num_tiles, n, c + 1), jnp.float32),
                   jax.ShapeDtypeStruct((num_tiles, n, 1), jnp.float32)),
        grid=(num_tiles,),
        in_specs=[pl.BlockSpec((n, c, hw_t), lambda t: (0, 0, t)),
                  pl.BlockSpec((n, c + 1, hw_t), lambda t: (0, 0, t))],
        out_specs=(pl.BlockSpec((1, n, c), lambda t: (t, 0, 0)),
                   pl.BlockSpec((1, n, c + 1), lambda t: (t, 0, 0)),
                   pl.BlockSpec((1, n, 1), lambda t: (t, 0, 0))),
        compiler_params=pltpu.CompilerParams(
            dimension_semantics=("parallel",),
            vmem_limit_bytes=_VMEM_LIMIT),
        cost_estimate=cost,
    )(logits3, target3)

    # ---- tiny cross-tile reductions + class-weight / denominator application --------
    s = jnp.sum(s_part, axis=0)                     # (N, C)
    hist_cnt = jnp.sum(hist_part, axis=0)           # (N, C+1)
    ign_cnt = jnp.sum(ign_part, axis=0)[:, 0]       # (N,)

    hist = hist_cnt / jnp.sum(hist_cnt, axis=1, keepdims=True)          # (N, C+1)
    present = (hist != 0).astype(jnp.float32)
    if norm:
        wcls = present * upper_bound / jnp.where(hist != 0, hist, 1.0) + 1.0
    else:
        wcls = present * upper_bound * (1.0 - hist) + 1.0
    wcls = wcls[:, :c]                                                   # (N, C)

    per_image = jnp.sum(wcls * s, axis=1)                                # (N,)
    denom = jnp.float32(hw) + 1.0 - ign_cnt                              # H*W - ignored + 1
    return jnp.sum(per_image / denom)


def reference_loss(logits, target, *, upper_bound=UPPER_BOUND, norm=NORM):
    """Plain-JAX transcription of the PyTorch forward (for verification)."""
    N, C, H, W = logits.shape
    tgt = target.astype(jnp.float32)
    weights = tgt[:, :-1].sum(1)                                # (N, H, W)
    ignore_mask = weights == 0
    weights = jnp.where(ignore_mask, 1.0, weights)
    loss = jnp.float32(0.0)
    for i in range(N):
        ti = tgt[i]                                             # (C+1, H, W)
        hist = ti.sum(axis=(1, 2)) / ti.sum()
        if norm:
            cw = (hist != 0) * upper_bound * (1.0 / hist) + 1.0
        else:
            cw = (hist != 0) * upper_bound * (1.0 - hist) + 1.0
        cw = cw[:-1]                                            # (C,)
        inp = logits[i:i + 1].astype(jnp.float32)               # (1, C, H, W)
        m = tgt[i:i + 1, :-1]                                   # (1, C, H, W)
        soft = jax.nn.softmax(inp, axis=1)
        smax = jnp.log(jnp.maximum(soft, m * (soft * m).sum(1, keepdims=True)))
        wts = cw[None, :, None, None]
        loss_matrix = (-1.0 / weights) * (m * wts * smax).sum(1) \
            * (1.0 - ignore_mask[i].astype(jnp.float32))
        l = loss_matrix.sum()
        l = l / (1 * H * W - ignore_mask[i].sum() + 1)
        loss = loss + l
    return loss


if __name__ == "__main__":
    N, C, H, W = 2, 4, 16, 16
    key = jax.random.PRNGKey(0)
    k1, k2 = jax.random.split(key)

    logits = jax.random.normal(k1, (N, C, H, W), dtype=jnp.float32)
    # Multi-hot target with C+1 channels; label C lights only the extra/border channel
    # and label C+1 gives fully-ignored pixels.
    lab = jax.random.randint(k2, (N, H, W), 0, C + 2)
    target = jax.nn.one_hot(lab, C + 2, dtype=jnp.float32)[..., :C + 1]
    target = jnp.transpose(target, (0, 3, 1, 2))                # (N, C+1, H, W)

    loss_kernel = jax.block_until_ready(img_wt_loss_soft_nll(logits, target))
    loss_ref = jax.block_until_ready(reference_loss(logits, target))
    np.testing.assert_allclose(np.array(loss_kernel), np.array(loss_ref),
                               rtol=2e-4, atol=1e-6)

    # Multi-tile + boundary-block path: HW = 16*18 = 288 with 128-lane tiles ->
    # three tiles, the last one partial (32 valid lanes), handled by in-kernel masking.
    H2, W2 = 16, 18
    k3, k4 = jax.random.split(k2)
    logits_b = jax.random.normal(k3, (N, C, H2, W2), dtype=jnp.float32)
    lab_b = jax.random.randint(k4, (N, H2, W2), 0, C + 2)
    target_b = jnp.transpose(
        jax.nn.one_hot(lab_b, C + 2, dtype=jnp.float32)[..., :C + 1], (0, 3, 1, 2))
    loss_kernel_b = jax.block_until_ready(
        img_wt_loss_soft_nll(logits_b, target_b, max_tile_lanes=128))
    loss_ref_b = jax.block_until_ready(reference_loss(logits_b, target_b))
    np.testing.assert_allclose(np.array(loss_kernel_b), np.array(loss_ref_b),
                               rtol=2e-4, atol=1e-6)

    print("KERNEL_OK")
</pallas_src>

<mosaic_0001>
module attributes {stable_mosaic.version = 11 : i64} {
  func.func @kernel(%arg0: i32, %arg1: memref<2x4x256xf32, #tpu.memory_space<vmem>>, %arg2: memref<2x5x256xf32, #tpu.memory_space<vmem>>, %arg3: memref<1x2x4xf32, #tpu.memory_space<vmem>>, %arg4: memref<1x2x5xf32, #tpu.memory_space<vmem>>, %arg5: memref<1x2x1xf32, #tpu.memory_space<vmem>>) attributes {dimension_semantics = [#tpu.dimension_semantics<parallel>], iteration_bounds = array<i64: 1>, scalar_prefetch = 0 : i64, scratch_operands = 0 : i64, tpu.core_type = #tpu.core_type<tc>, window_params = [{transform_indices = @transform_0, window_bounds = array<i64: 2, 4, 256>}, {transform_indices = @transform_1, window_bounds = array<i64: 2, 5, 256>}, {transform_indices = @transform_2, window_bounds = array<i64: 1, 2, 4>}, {transform_indices = @transform_3, window_bounds = array<i64: 1, 2, 5>}, {transform_indices = @transform_4, window_bounds = array<i64: 1, 2, 1>}]} {
    %c0 = arith.constant 0 : index
    %c0_0 = arith.constant 0 : index
    %c0_1 = arith.constant 0 : index
    %0 = vector.load %arg1[%c0, %c0_0, %c0_1] : memref<2x4x256xf32, #tpu.memory_space<vmem>>, vector<2x1x256xf32>
    %1 = vector.shape_cast %0 : vector<2x1x256xf32> to vector<2x256xf32>
    %c0_2 = arith.constant 0 : index
    %c1 = arith.constant 1 : index
    %c0_3 = arith.constant 0 : index
    %2 = vector.load %arg1[%c0_2, %c1, %c0_3] : memref<2x4x256xf32, #tpu.memory_space<vmem>>, vector<2x1x256xf32>
    %3 = vector.shape_cast %2 : vector<2x1x256xf32> to vector<2x256xf32>
    %4 = arith.maximumf %1, %3 : vector<2x256xf32>
    %c0_4 = arith.constant 0 : index
    %c2 = arith.constant 2 : index
    %c0_5 = arith.constant 0 : index
    %5 = vector.load %arg1[%c0_4, %c2, %c0_5] : memref<2x4x256xf32, #tpu.memory_space<vmem>>, vector<2x1x256xf32>
    %6 = vector.shape_cast %5 : vector<2x1x256xf32> to vector<2x256xf32>
    %7 = arith.maximumf %4, %6 : vector<2x256xf32>
    %c0_6 = arith.constant 0 : index
    %c3 = arith.constant 3 : index
    %c0_7 = arith.constant 0 : index
    %8 = vector.load %arg1[%c0_6, %c3, %c0_7] : memref<2x4x256xf32, #tpu.memory_space<vmem>>, vector<2x1x256xf32>
    %9 = vector.shape_cast %8 : vector<2x1x256xf32> to vector<2x256xf32>
    %10 = arith.maximumf %7, %9 : vector<2x256xf32>
    %cst = arith.constant 0.000000e+00 : f32
    %11 = vector.broadcast %cst : f32 to vector<2x256xf32>
    %cst_8 = arith.constant 0.000000e+00 : f32
    %12 = vector.broadcast %cst_8 : f32 to vector<2x256xf32>
    %cst_9 = arith.constant 0.000000e+00 : f32
    %13 = vector.broadcast %cst_9 : f32 to vector<2x256xf32>
    %c0_10 = arith.constant 0 : index
    %c0_11 = arith.constant 0 : index
    %c0_12 = arith.constant 0 : index
    %14 = vector.load %arg1[%c0_10, %c0_11, %c0_12] : memref<2x4x256xf32, #tpu.memory_space<vmem>>, vector<2x1x256xf32>
    %15 = vector.shape_cast %14 : vector<2x1x256xf32> to vector<2x256xf32>
    %16 = arith.subf %15, %10 : vector<2x256xf32>
    %17 = math.exp %16 : vector<2x256xf32>
    %c0_13 = arith.constant 0 : index
    %c0_14 = arith.constant 0 : index
    %c0_15 = arith.constant 0 : index
    %18 = vector.load %arg2[%c0_13, %c0_14, %c0_15] : memref<2x5x256xf32, #tpu.memory_space<vmem>>, vector<2x1x256xf32>
    %19 = vector.shape_cast %18 : vector<2x1x256xf32> to vector<2x256xf32>
    %20 = arith.addf %11, %17 : vector<2x256xf32>
    %21 = arith.mulf %17, %19 : vector<2x256xf32>
    %22 = arith.addf %12, %21 : vector<2x256xf32>
    %23 = arith.addf %13, %19 : vector<2x256xf32>
    %cst_16 = arith.constant dense<0.000000e+00> : vector<2xf32>
    %24 = vector.multi_reduction <add>, %19, %cst_16 [1] : vector<2x256xf32> to vector<2xf32>
    %25 = vector.shape_cast %24 : vector<2xf32> to vector<2x1xf32>
    %c0_17 = arith.constant 0 : index
    %c1_18 = arith.constant 1 : index
    %c0_19 = arith.constant 0 : index
    %26 = vector.load %arg1[%c0_17, %c1_18, %c0_19] : memref<2x4x256xf32, #tpu.memory_space<vmem>>, vector<2x1x256xf32>
    %27 = vector.shape_cast %26 : vector<2x1x256xf32> to vector<2x256xf32>
    %28 = arith.subf %27, %10 : vector<2x256xf32>
    %29 = math.exp %28 : vector<2x256xf32>
    %c0_20 = arith.constant 0 : index
    %c1_21 = arith.constant 1 : index
    %c0_22 = arith.constant 0 : index
    %30 = vector.load %arg2[%c0_20, %c1_21, %c0_22] : memref<2x5x256xf32, #tpu.memory_space<vmem>>, vector<2x1x256xf32>
    %31 = vector.shape_cast %30 : vector<2x1x256xf32> to vector<2x256xf32>
    %32 = arith.addf %20, %29 : vector<2x256xf32>
    %33 = arith.mulf %29, %31 : vector<2x256xf32>
    %34 = arith.addf %22, %33 : vector<2x256xf32>
    %35 = arith.addf %23, %31 : vector<2x256xf32>
    %cst_23 = arith.constant dense<0.000000e+00> : vector<2xf32>
    %36 = vector.multi_reduction <add>, %31, %cst_23 [1] : vector<2x256xf32> to vector<2xf32>
    %37 = vector.shape_cast %36 : vector<2xf32> to vector<2x1xf32>
    %c0_24 = arith.constant 0 : index
    %c2_25 = arith.constant 2 : index
    %c0_26 = arith.constant 0 : index
    %38 = vector.load %arg1[%c0_24, %c2_25, %c0_26] : memref<2x4x256xf32, #tpu.memory_space<vmem>>, vector<2x1x256xf32>
    %39 = vector.shape_cast %38 : vector<2x1x256xf32> to vector<2x256xf32>
    %40 = arith.subf %39, %10 : vector<2x256xf32>
    %41 = math.exp %40 : vector<2x256xf32>
    %c0_27 = arith.constant 0 : index
    %c2_28 = arith.constant 2 : index
    %c0_29 = arith.constant 0 : index
    %42 = vector.load %arg2[%c0_27, %c2_28, %c0_29] : memref<2x5x256xf32, #tpu.memory_space<vmem>>, vector<2x1x256xf32>
    %43 = vector.shape_cast %42 : vector<2x1x256xf32> to vector<2x256xf32>
    %44 = arith.addf %32, %41 : vector<2x256xf32>
    %45 = arith.mulf %41, %43 : vector<2x256xf32>
    %46 = arith.addf %34, %45 : vector<2x256xf32>
    %47 = arith.addf %35, %43 : vector<2x256xf32>
    %cst_30 = arith.constant dense<0.000000e+00> : vector<2xf32>
    %48 = vector.multi_reduction <add>, %43, %cst_30 [1] : vector<2x256xf32> to vector<2xf32>
    %49 = vector.shape_cast %48 : vector<2xf32> to vector<2x1xf32>
    %c0_31 = arith.constant 0 : index
    %c3_32 = arith.constant 3 : index
    %c0_33 = arith.constant 0 : index
    %50 = vector.load %arg1[%c0_31, %c3_32, %c0_33] : memref<2x4x256xf32, #tpu.memory_space<vmem>>, vector<2x1x256xf32>
    %51 = vector.shape_cast %50 : vector<2x1x256xf32> to vector<2x256xf32>
    %52 = arith.subf %51, %10 : vector<2x256xf32>
    %53 = math.exp %52 : vector<2x256xf32>
    %c0_34 = arith.constant 0 : index
    %c3_35 = arith.constant 3 : index
    %c0_36 = arith.constant 0 : index
    %54 = vector.load %arg2[%c0_34, %c3_35, %c0_36] : memref<2x5x256xf32, #tpu.memory_space<vmem>>, vector<2x1x256xf32>
    %55 = vector.shape_cast %54 : vector<2x1x256xf32> to vector<2x256xf32>
    %56 = arith.addf %44, %53 : vector<2x256xf32>
    %57 = arith.mulf %53, %55 : vector<2x256xf32>
    %58 = arith.addf %46, %57 : vector<2x256xf32>
    %59 = arith.addf %47, %55 : vector<2x256xf32>
    %cst_37 = arith.constant dense<0.000000e+00> : vector<2xf32>
    %60 = vector.multi_reduction <add>, %55, %cst_37 [1] : vector<2x256xf32> to vector<2xf32>
    %61 = vector.shape_cast %60 : vector<2xf32> to vector<2x1xf32>
    %c0_38 = arith.constant 0 : index
    %c4 = arith.constant 4 : index
    %c0_39 = arith.constant 0 : index
    %62 = vector.load %arg2[%c0_38, %c4, %c0_39] : memref<2x5x256xf32, #tpu.memory_space<vmem>>, vector<2x1x256xf32>
    %63 = vector.shape_cast %62 : vector<2x1x256xf32> to vector<2x256xf32>
    %cst_40 = arith.constant dense<0.000000e+00> : vector<2xf32>
    %64 = vector.multi_reduction <add>, %63, %cst_40 [1] : vector<2x256xf32> to vector<2xf32>
    %65 = vector.shape_cast %64 : vector<2xf32> to vector<2x1xf32>
    %66 = tpu.concatenate %25, %37, %49, %61, %65 in 1 : vector<2x1xf32>, vector<2x1xf32>, vector<2x1xf32>, vector<2x1xf32>, vector<2x1xf32> -> vector<2x5xf32>
    %67 = vector.shape_cast %66 : vector<2x5xf32> to vector<1x2x5xf32>
    %c0_41 = arith.constant 0 : index
    %c0_42 = arith.constant 0 : index
    %c0_43 = arith.constant 0 : index
    %68 = vector.load %arg4[%c0_41, %c0_42, %c0_43] : memref<1x2x5xf32, #tpu.memory_space<vmem>>, vector<1x2x5xf32>
    tpu.vector_store %arg4[%c0_41, %c0_42, %c0_43], %67 {strides = array<i32>} : memref<1x2x5xf32, #tpu.memory_space<vmem>>, vector<1x2x5xf32>,
    %cst_44 = arith.constant 0.000000e+00 : f32
    %69 = vector.broadcast %cst_44 : f32 to vector<2x256xf32>
    %70 = arith.cmpf oeq, %59, %69 : vector<2x256xf32>
    %71 = arith.extui %70 : vector<2x256xi1> to vector<2x256xi32>
    %72 = arith.sitofp %71 : vector<2x256xi32> to vector<2x256xf32>
    %cst_45 = arith.constant 1.000000e+00 : f32
    %73 = vector.broadcast %cst_45 : f32 to vector<2x256xf32>
    %74 = arith.subf %73, %72 : vector<2x256xf32>
    %75 = arith.extui %70 : vector<2x256xi1> to vector<2x256xi32>
    %76 = arith.sitofp %75 : vector<2x256xi32> to vector<2x256xf32>
    %cst_46 = arith.constant dense<0.000000e+00> : vector<2xf32>
    %77 = vector.multi_reduction <add>, %76, %cst_46 [1] : vector<2x256xf32> to vector<2xf32>
    %78 = vector.shape_cast %77 : vector<2xf32> to vector<2x1xf32>
    %79 = vector.shape_cast %78 : vector<2x1xf32> to vector<1x2x1xf32>
    %c0_47 = arith.constant 0 : index
    %c0_48 = arith.constant 0 : index
    %c0_49 = arith.constant 0 : index
    %80 = vector.load %arg5[%c0_47, %c0_48, %c0_49] : memref<1x2x1xf32, #tpu.memory_space<vmem>>, vector<1x2x1xf32>
    tpu.vector_store %arg5[%c0_47, %c0_48, %c0_49], %79 {strides = array<i32>} : memref<1x2x1xf32, #tpu.memory_space<vmem>>, vector<1x2x1xf32>,
    %cst_50 = arith.constant 1.000000e+00 : f32
    %81 = vector.broadcast %cst_50 : f32 to vector<2x256xf32>
    %82 = arith.select %70, %81, %59 : vector<2x256xi1>, vector<2x256xf32>
    %cst_51 = arith.constant 1.000000e+00 : f32
    %83 = vector.broadcast %cst_51 : f32 to vector<2x256xf32>
    %84 = arith.divf %83, %82 : vector<2x256xf32>
    %cst_52 = arith.constant dense<0.000000e+00> : vector<256xf32>
    %85 = vector.multi_reduction <add>, %84, %cst_52 [0] : vector<2x256xf32> to vector<256xf32>
    %86 = vector.shape_cast %85 : vector<256xf32> to vector<1x256xf32>
    %cst_53 = arith.constant 1.000000e+00 : f32
    %87 = vector.broadcast %cst_53 : f32 to vector<2x256xf32>
    %88 = arith.select %70, %87, %58 : vector<2x256xi1>, vector<2x256xf32>
    %89 = math.log %88 : vector<2x256xf32>
    %90 = math.log %56 : vector<2x256xf32>
    %91 = arith.subf %89, %90 : vector<2x256xf32>
    %cst_54 = arith.constant 0.000000e+00 : f32
    %92 = vector.broadcast %cst_54 : f32 to vector<1x256xf32>
    %93 = arith.subf %92, %86 : vector<1x256xf32>
    %94 = vector.broadcast %93 : vector<1x256xf32> to vector<2x256xf32>
    %95 = arith.mulf %94, %91 : vector<2x256xf32>
    %96 = arith.mulf %95, %74 : vector<2x256xf32>
    %c0_55 = arith.constant 0 : index
    %c0_56 = arith.constant 0 : index
    %c0_57 = arith.constant 0 : index
    %97 = vector.load %arg2[%c0_55, %c0_56, %c0_57] : memref<2x5x256xf32, #tpu.memory_space<vmem>>, vector<2x1x256xf32>
    %98 = vector.shape_cast %97 : vector<2x1x256xf32> to vector<2x256xf32>
    %99 = arith.mulf %96, %98 : vector<2x256xf32>
    %cst_58 = arith.constant dense<0.000000e+00> : vector<2xf32>
    %100 = vector.multi_reduction <add>, %99, %cst_58 [1] : vector<2x256xf32> to vector<2xf32>
    %101 = vector.shape_cast %100 : vector<2xf32> to vector<2x1xf32>
    %c0_59 = arith.constant 0 : index
    %c1_60 = arith.constant 1 : index
    %c0_61 = arith.constant 0 : index
    %102 = vector.load %arg2[%c0_59, %c1_60, %c0_61] : memref<2x5x256xf32, #tpu.memory_space<vmem>>, vector<2x1x256xf32>
    %103 = vector.shape_cast %102 : vector<2x1x256xf32> to vector<2x256xf32>
    %104 = arith.mulf %96, %103 : vector<2x256xf32>
    %cst_62 = arith.constant dense<0.000000e+00> : vector<2xf32>
    %105 = vector.multi_reduction <add>, %104, %cst_62 [1] : vector<2x256xf32> to vector<2xf32>
    %106 = vector.shape_cast %105 : vector<2xf32> to vector<2x1xf32>
    %c0_63 = arith.constant 0 : index
    %c2_64 = arith.constant 2 : index
    %c0_65 = arith.constant 0 : index
    %107 = vector.load %arg2[%c0_63, %c2_64, %c0_65] : memref<2x5x256xf32, #tpu.memory_space<vmem>>, vector<2x1x256xf32>
    %108 = vector.shape_cast %107 : vector<2x1x256xf32> to vector<2x256xf32>
    %109 = arith.mulf %96, %108 : vector<2x256xf32>
    %cst_66 = arith.constant dense<0.000000e+00> : vector<2xf32>
    %110 = vector.multi_reduction <add>, %109, %cst_66 [1] : vector<2x256xf32> to vector<2xf32>
    %111 = vector.shape_cast %110 : vector<2xf32> to vector<2x1xf32>
    %c0_67 = arith.constant 0 : index
    %c3_68 = arith.constant 3 : index
    %c0_69 = arith.constant 0 : index
    %112 = vector.load %arg2[%c0_67, %c3_68, %c0_69] : memref<2x5x256xf32, #tpu.memory_space<vmem>>, vector<2x1x256xf32>
    %113 = vector.shape_cast %112 : vector<2x1x256xf32> to vector<2x256xf32>
    %114 = arith.mulf %96, %113 : vector<2x256xf32>
    %cst_70 = arith.constant dense<0.000000e+00> : vector<2xf32>
    %115 = vector.multi_reduction <add>, %114, %cst_70 [1] : vector<2x256xf32> to vector<2xf32>
    %116 = vector.shape_cast %115 : vector<2xf32> to vector<2x1xf32>
    %117 = tpu.concatenate %101, %106, %111, %116 in 1 : vector<2x1xf32>, vector<2x1xf32>, vector<2x1xf32>, vector<2x1xf32> -> vector<2x4xf32>
    %118 = vector.shape_cast %117 : vector<2x4xf32> to vector<1x2x4xf32>
    %c0_71 = arith.constant 0 : index
    %c0_72 = arith.constant 0 : index
    %c0_73 = arith.constant 0 : index
    %119 = vector.load %arg3[%c0_71, %c0_72, %c0_73] : memref<1x2x4xf32, #tpu.memory_space<vmem>>, vector<1x2x4xf32>
    tpu.vector_store %arg3[%c0_71, %c0_72, %c0_73], %118 {strides = array<i32>} : memref<1x2x4xf32, #tpu.memory_space<vmem>>, vector<1x2x4xf32>,
    return
  }
  func.func @transform_0(%arg0: i32) -> (i32, i32, i32) {
    %c0_i32 = arith.constant 0 : i32
    %c0_i32_0 = arith.constant 0 : i32
    %c0_i32_1 = arith.constant 0 : i32
    return %c0_i32, %c0_i32_0, %arg0 : i32, i32, i32
  }
  func.func @transform_1(%arg0: i32) -> (i32, i32, i32) {
    %c0_i32 = arith.constant 0 : i32
    %c0_i32_0 = arith.constant 0 : i32
    %c0_i32_1 = arith.constant 0 : i32
    return %c0_i32, %c0_i32_0, %arg0 : i32, i32, i32
  }
  func.func @transform_2(%arg0: i32) -> (i32, i32, i32) {
    %c0_i32 = arith.constant 0 : i32
    %c0_i32_0 = arith.constant 0 : i32
    %c0_i32_1 = arith.constant 0 : i32
    return %arg0, %c0_i32, %c0_i32_0 : i32, i32, i32
  }
  func.func @transform_3(%arg0: i32) -> (i32, i32, i32) {
    %c0_i32 = arith.constant 0 : i32
    %c0_i32_0 = arith.constant 0 : i32
    %c0_i32_1 = arith.constant 0 : i32
    return %arg0, %c0_i32, %c0_i32_0 : i32, i32, i32
  }
  func.func @transform_4(%arg0: i32) -> (i32, i32, i32) {
    %c0_i32 = arith.constant 0 : i32
    %c0_i32_0 = arith.constant 0 : i32
    %c0_i32_1 = arith.constant 0 : i32
    return %arg0, %c0_i32, %c0_i32_0 : i32, i32, i32
  }
}

</mosaic_0001>

<bundles_post_ra>
// kernel: tpu_custom_call.1
= control target key start
LH: loop header
LB: loop body
LE: loop exit
PB: predicated region body
PF: predicated region fallthrough
CT: control target
= control target key end

     0   :  { %10 = vsyncpa [#allocation3], 0  ;;  %vm63_vm0 = vcmask 1041408   ;;  %s796_s0 = inlined_call_operand.vmem [shape: f32[2,4,256], index: 0, kind: input, shape index: {}]   ;;  %s797_s1 = inlined_call_operand.vmem [shape: f32[2,5,256], index: 1, kind: input, shape index: {}]   ;;  %s798_s2 = inlined_call_operand.hbm [shape: f32[1,2,4], index: 2, kind: output, shape index: {0}]   ;;  %s799_s3 = inlined_call_operand.hbm [shape: f32[1,2,5], index: 3, kind: output, shape index: {1}]   ;;  %s800_s4 = inlined_call_operand.vmem [shape: f32[1,2,1], index: 4, kind: output, shape index: {2}]  }
   0x1   :  { %v562_v0 = vld [vmem:[%s797_s1] ss:$8 sm:$0x3]  ;;  %v567_v1 = vld [vmem:[%s797_s1 + $0x10] ss:$8 sm:$0x3] }
   0x2   :  { %56 = vst [vmem:[#allocation1] ss:$9 sm:$0xff] %v562_v0  ;;  %v574_v2 = vld [vmem:[%s797_s1 + $0x1] ss:$8 sm:$0x3] }
   0x3   :  { %58 = vst [vmem:[#allocation1 + $0x1] ss:$9 sm:$0xff] %v567_v1  ;;  %v579_v3 = vld [vmem:[%s797_s1 + $0x11] ss:$8 sm:$0x3]  ;;  %v85_v4 = vadd.f32 %v574_v2, %v562_v0 }
   0x4   :  { %v586_v5 = vld [vmem:[%s797_s1 + $0x2] ss:$8 sm:$0x3]  ;;  %v16_v6 = vld [vmem:[%s796_s0] ss:$4 sm:$0x3]  ;;  %v86_v8 = vadd.f32 %v579_v3, %v567_v1 }
   0x5   :  { %v423_v7 = vld [vmem:[%s796_s0 + $0x8] ss:$4 sm:$0x3]  ;;  %v424_v9 = vld [vmem:[%s796_s0 + $0x1] ss:$4 sm:$0x3]  ;;  %v117_v15 = vadd.f32 %v586_v5, %v85_v4 }
   0x6   :  { %v425_v10 = vld [vmem:[%s796_s0 + $0x9] ss:$4 sm:$0x3]  ;;  %v23_v11 = vmax.f32 %v16_v6, %v424_v9  ;;  %v426_v13 = vld [vmem:[%s796_s0 + $0x2] ss:$4 sm:$0x3] }
   0x7   :  { %v24_v12 = vmax.f32 %v423_v7, %v425_v10  ;;  %v427_v14 = vld [vmem:[%s796_s0 + $0xa] ss:$4 sm:$0x3]  ;;  %v428_v16 = vld [vmem:[%s796_s0 + $0x3] ss:$4 sm:$0x3] }
   0x8   :  { %v429_v17 = vld [vmem:[%s796_s0 + $0xb] ss:$4 sm:$0x3]  ;;  %v618_v20 = vld [vmem:[%s797_s1 + $0x12] ss:$8 sm:$0x3]  ;;  %v29_v21 = vmax.f32 %v23_v11, %v426_v13 }
   0x9   :  { %v30_v22 = vmax.f32 %v24_v12, %v427_v14  ;;  %v118_v23 = vadd.f32 %v618_v20, %v86_v8  ;;  %v628_v26 = vld [vmem:[%s797_s1 + $0x3] ss:$8 sm:$0x3] }
   0xa   :  { %v59_v18 = vld [vmem:[#allocation1] sm:$0xff]  ;;  %v60_v19 = vld [vmem:[#allocation1 + $0x9] sm:$0xff]  ;;  %v35_v27 = vmax.f32 %v29_v21, %v428_v16  ;;  %v631_v30 = vadd.f32 %v628_v26, %v117_v15 }
   0xb   :  { %89 = vst [vmem:[#allocation1] ss:$9 sm:$0xff] %v574_v2  ;;  %v64_v24 = vsel %vm63_vm0, %v59_v18, 0.0  ;;  %v65_v25 = vsel %vm63_vm0, %v60_v19, 0.0  ;;  %v36_v28 = vmax.f32 %v30_v22, %v429_v17 }
   0xc   :  { %91 = vst [vmem:[#allocation1 + $0x1] ss:$9 sm:$0xff] %v579_v3  ;;  %v66_v29 = vadd.f32 %v65_v25, %v64_v24 }
   0xd   :  { %11 = vsyncpa [#allocation5], 0  ;;  %v636_v31 = vld [vmem:[%s797_s1 + $0x13] ss:$8 sm:$0x3]  ;;  %v37_v32 = vsub.f32 %v16_v6, %v35_v27  ;;  %v38_v33 = vsub.f32 %v423_v7, %v36_v28  ;;  %v69_v34 = vsub.f32 %v424_v9, %v35_v27  ;;  %v70_v35 = vsub.f32 %v425_v10, %v36_v28  ;;  %s405_s0 = sshll.u32 %s799_s3, 4  ;;  %s406_s0 = int_to_ptr.hbm [resolvable:$true] %s405_s0 }
   0xe   :  { %67 = vadd.xlane.f32.xlu0 %v66_v29  ;;  %v639_v36 = vadd.f32 %v636_v31, %v118_v23  ;;  %v101_v40 = vsub.f32 %v426_v13, %v35_v27  ;;  %v102_v42 = vsub.f32 %v427_v14, %v36_v28  ;;  %vm193_vm1 = vcmp.eq.f32.partialorder %v631_v30, 0.0  ;;  %s533_s17 = smov [#allocation2]   ;;  %s394_s3 = sshll.u32 %s798_s2, 4  ;;  %s395_s3 = int_to_ptr.hbm [resolvable:$true] %s394_s3 }
   0xf   :  { %v39_v37 = vmul.f32 1.442695, %v37_v32  ;;  %v41_v38 = vmul.f32 1.442695, %v38_v33  ;;  %v71_v39 = vmul.f32 1.442695, %v69_v34  ;;  %v133_v46 = vsub.f32 %v428_v16, %v35_v27 }
  0x10   :  { %v73_v41 = vmul.f32 1.442695, %v70_v35  ;;  %vm194_vm2 = vcmp.eq.f32.partialorder %v639_v36, 0.0  ;;  %v103_v45 = vmul.f32 1.442695, %v101_v40  ;;  %v651_v47 = vsel %vm193_vm1, 1.0, %v631_v30 }
  0x11   :  { %451 = vpow2.f32 %v39_v37  ;;  %v105_v48 = vmul.f32 1.442695, %v102_v42  ;;  %v134_v49 = vsub.f32 %v429_v17, %v36_v28  ;;  %v657_v50 = vsel %vm194_vm2, 1.0, %v639_v36  ;;  %s392_s18 = sshll.u32 %s533_s17, 4  ;;  %s393_s18 = int_to_ptr.vmem [resolvable:$true] %s392_s18 }
  0x12   :  { %453 = vpow2.f32 %v41_v38  ;;  %v135_v52 = vmul.f32 1.442695, %v133_v46  ;;  %vm224_vm3 = vweird.f32 %v651_v47  ;;  %v228_v40 = vand.u32 2147483647, %v651_v47 }
  0x13   :  { %v642_v43 = vld [vmem:[#allocation1] sm:$0xff]  ;;  %v644_v44 = vld [vmem:[#allocation1 + $0x9] sm:$0xff]  ;;  %455 = vpow2.f32 %v71_v39  ;;  %v137_v54 = vmul.f32 1.442695, %v134_v49  ;;  %v230_v39 = vand.u32 2147483648, %v651_v47  ;;  %vm239_vm5 = vweird.f32 %v657_v50 }
  0x14   :  { %121 = vst [vmem:[#allocation1] ss:$9 sm:$0xff] %v586_v5  ;;  %457 = vpow2.f32 %v73_v41  ;;  %vm229_vm9 = vcmp.eq.f32.partialorder %v228_v40, 8.507059e+37  ;;  %vm183_vm11 = vcmask 7168   ;;  %vm185_vm12 = vcmask 15360  }
  0x15   :  { %123 = vst [vmem:[#allocation1 + $0x1] ss:$9 sm:$0xff] %v618_v20  ;;  %459 = vrcp.f32 %v651_v47  ;;  %v231_v36 = vor.u32 1.1754944e-38, %v230_v39  ;;  %vm187_vm13 = vcmask 23552   ;;  %vm189_vm14 = vcmask 31744  }
  0x16   :  { %461 = vpow2.f32 %v103_v45  ;;  %vm191_vm15 = vcmask 33792  }
  0x17   :  { %v452_v51 = vpop.eup %451  ;;  %463 = vpow2.f32 %v105_v48  ;;  %v245_v48 = vand.u32 2147483648, %v657_v50 }
  0x18   :  { %v454_v53 = vpop.eup %453  ;;  %465 = vrcp.f32 %v657_v50  ;;  %v48_v59 = vmul.f32 %v452_v51, %v562_v0 }
  0x19   :  { %v456_v55 = vpop.eup %455  ;;  %467 = vpow2.f32 %v135_v52  ;;  %v49_v7 = vmul.f32 %v454_v53, %v567_v1  ;;  %v437_v1 = vld [vmem:[%s797_s1 + $0x4] ss:$8 sm:$0x3] }
  0x1a   :  { %v458_v56 = vpop.eup %457  ;;  %v81_v63 = vmul.f32 %v456_v55, %v574_v2  ;;  %469 = vpow2.f32 %v137_v54  ;;  %v79_v13 = vadd.f32 %v456_v55, %v452_v51  ;;  %v243_v51 = vand.u32 2147483647, %v657_v50 }
  0x1b   :  { %v662_v60 = vpop.eup %459  ;;  %v82_v0 = vmul.f32 %v458_v56, %v579_v3  ;;  %v80_v17 = vadd.f32 %v458_v56, %v454_v53  ;;  %v246_v53 = vor.u32 1.1754944e-38, %v245_v48  ;;  %v443_v48 = vld [vmem:[%s797_s1 + $0x11] ss:$8 sm:$0x3] }
  0x1c   :  { %v124_v57 = vld [vmem:[#allocation1] sm:$0xff]  ;;  %v125_v58 = vld [vmem:[#allocation1 + $0x9] sm:$0xff]  ;;  %v462_v4 = vpop.eup %461  ;;  %v83_v10 = vadd.f32 %v81_v63, %v48_v59  ;;  %v220_v15 = vmul.f32 %v662_v60, %v651_v47  ;;  %vm225_vm4 = vweird.f32 %v662_v60  ;;  %vm244_vm10 = vcmp.eq.f32.partialorder %v243_v51, 8.507059e+37 }
  0x1d   :  { %v128_v61 = vsel %vm63_vm0, %v124_v57, 0.0  ;;  %v129_v62 = vsel %vm63_vm0, %v125_v58, 0.0  ;;  %153 = vst [vmem:[#allocation1] ss:$9 sm:$0xff] %v628_v26  ;;  %v464_v8 = vpop.eup %463  ;;  %v113_v11 = vmul.f32 %v462_v4, %v586_v5  ;;  %v84_v14 = vadd.f32 %v82_v0, %v49_v7  ;;  %vm718_vm7 = vmor %vm224_vm3, %vm225_vm4 }
  0x1e   :  { %v130_v6 = vadd.f32 %v129_v62, %v128_v61  ;;  %155 = vst [vmem:[#allocation1 + $0x1] ss:$9 sm:$0xff] %v636_v31  ;;  %v671_v9 = vpop.eup %465  ;;  %v114_v2 = vmul.f32 %v464_v8, %v618_v20  ;;  %v438_v5 = vld [vmem:[%s797_s1 + $0x14] ss:$8 sm:$0x3]  ;;  %v111_v22 = vadd.f32 %v462_v4, %v79_v13  ;;  %v221_v25 = vsub.f32 1.0, %v220_v15 }
  0x1f   :  { %v468_v12 = vpop.eup %467  ;;  %v235_v3 = vmul.f32 %v671_v9, %v657_v50  ;;  %v115_v18 = vadd.f32 %v113_v11, %v83_v10  ;;  %v112_v27 = vadd.f32 %v464_v8, %v80_v17  ;;  %vm240_vm6 = vweird.f32 %v671_v9 }
  0x20   :  { %131 = vadd.xlane.f32.xlu1 %v130_v6  ;;  %v470_v16 = vpop.eup %469  ;;  %v145_v19 = vmul.f32 %v468_v12, %v628_v26  ;;  %v116_v23 = vadd.f32 %v114_v2, %v84_v14  ;;  %v143_v33 = vadd.f32 %v468_v12, %v111_v22  ;;  %v222_v34 = vmul.f32 %v662_v60, %v221_v25  ;;  %vm241_vm8 = vmor %vm239_vm5, %vm240_vm6 }
  0x21   :  { %v146_v24 = vmul.f32 %v470_v16, %v636_v31  ;;  %v236_v28 = vsub.f32 1.0, %v235_v3  ;;  %v144_v35 = vadd.f32 %v470_v16, %v112_v27  ;;  %v531_v26 = vmov 0.0  }
  0x22   :  { %v147_v29 = vadd.f32 %v145_v19, %v115_v18  ;;  %v694_v37 = vsel %vm193_vm1, 1.0, %v531_v26  ;;  %v699_v31 = vsel %vm194_vm2, 1.0, %v531_v26  ;;  %v223_v46 = vadd.f32 %v662_v60, %v222_v34  ;;  %v441_v26 = vld [vmem:[%s797_s1 + $0x10] ss:$8 sm:$0x3] }
  0x23   :  { %v148_v32 = vadd.f32 %v146_v24, %v116_v23  ;;  %v237_v38 = vmul.f32 %v671_v9, %v236_v28  ;;  %471 = vlog2.f32 %v143_v33  ;;  %v97_v11 = vsel %vm63_vm0, %v644_v44, 0.0 }
  0x24   :  { %v272_v41 = vsel %vm193_vm1, 1.0, %v147_v29  ;;  %473 = vlog2.f32 %v144_v35  ;;  %v227_v52 = vsel %vm718_vm7, %v662_v60, %v223_v46  ;;  %v199_v44 = vsub.f32 1.0, %v694_v37  ;;  %v310_v35 = vld [vmem:[%s797_s1] ss:$8 sm:$0x3] }
  0x25   :  { %v686_v20 = vld [vmem:[#allocation1] sm:$0xff]  ;;  %v688_v21 = vld [vmem:[#allocation1 + $0x9] sm:$0xff]  ;;  %v273_v49 = vsel %vm194_vm2, 1.0, %v148_v32  ;;  %v238_v30 = vadd.f32 %v671_v9, %v237_v38  ;;  %475 = vlog2.f32 %v272_v41  ;;  %v232_v57 = vsel %vm229_vm9, %v231_v36, %v227_v52 }
  0x26   :  { %171 = vst [vmem:[#allocation1] ss:$9 sm:$0xff] %v437_v1  ;;  %477 = vlog2.f32 %v273_v49  ;;  %v160_v2 = vsel %vm63_vm0, %v686_v20, 0.0  ;;  %v161_v17 = vsel %vm63_vm0, %v688_v21, 0.0  ;;  %v200_v19 = vsub.f32 1.0, %v699_v31 }
  0x27   :  { %173 = vst [vmem:[#allocation1 + $0x1] ss:$9 sm:$0xff] %v438_v5  ;;  %v242_v54 = vsel %vm241_vm8, %v671_v9, %v238_v30  ;;  %v96_v9 = vsel %vm63_vm0, %v642_v43, 0.0  ;;  %v162_v43 = vadd.f32 %v161_v17, %v160_v2  ;;  %v442_v46 = vld [vmem:[%s797_s1 + $0x1] ss:$8 sm:$0x3] }
  0x28   :  { %v247_v59 = vsel %vm244_vm10, %v246_v53, %v242_v54  ;;  %v98_v14 = vadd.f32 %v97_v11, %v96_v9  ;;  %vm385_vm1 = vcmask 25600  }
  0x29   :  { %v472_v55 = vpop.eup %471  ;;  %163 = vadd.xlane.f32.xlu2 %v162_v43 }
  0x2a   :  { %v474_v56 = vpop.eup %473  ;;  %v279_v4 = vmul.f32 0.6931472, %v472_v55  ;;  %99 = vadd.xlane.f32.xlu0 %v98_v14 }
  0x2b   :  { %v476_v58 = vpop.eup %475  ;;  %v281_v7 = vmul.f32 0.6931472, %v474_v56 }
  0x2c   :  { %v478_v61 = vpop.eup %477  ;;  %v275_v63 = vmul.f32 0.6931472, %v476_v58 }
  0x2d   :  { %v277_v6 = vmul.f32 0.6931472, %v478_v61  ;;  %v445_v61 = vld [vmem:[%s797_s1 + $0x12] ss:$8 sm:$0x3] }
  0x2e   :  { %v709_v42 = vld [vmem:[#allocation1] sm:$0xff]  ;;  %v711_v45 = vld [vmem:[#allocation1 + $0x9] sm:$0xff]  ;;  %v282_v60 = vsub.f32 %v275_v63, %v279_v4 }
  0x2f   :  { %203 = vst [vmem:[#allocation1] ss:$9 sm:$0xff] %v694_v37  ;;  %v283_v0 = vsub.f32 %v277_v6, %v281_v7  ;;  %v179_v58 = vsel %vm63_vm0, %v711_v45, 0.0 }
  0x30   :  { %205 = vst [vmem:[#allocation1 + $0x1] ss:$9 sm:$0xff] %v699_v31 }
  0x37   :  { %v206_v50 = vld [vmem:[#allocation1] sm:$0xff]  ;;  %v207_v62 = vld [vmem:[#allocation1 + $0x9] sm:$0xff] }
  0x38   :  { %251 = vst [vmem:[#allocation1] ss:$9 sm:$0xff] %v232_v57  ;;  %v210_v30 = vsel %vm63_vm0, %v206_v50, 0.0  ;;  %v211_v51 = vsel %vm63_vm0, %v207_v62, 0.0  ;;  %v178_v57 = vsel %vm63_vm0, %v709_v42, 0.0 }
  0x39   :  { %253 = vst [vmem:[#allocation1 + $0x1] ss:$9 sm:$0xff] %v247_v59  ;;  %v212_v53 = vadd.f32 %v211_v51, %v210_v30  ;;  %v444_v59 = vld [vmem:[%s797_s1 + $0x2] ss:$8 sm:$0x3]  ;;  %v180_v63 = vadd.f32 %v179_v58, %v178_v57 }
  0x40   :  { %v254_v8 = vld [vmem:[#allocation1] sm:$0xff]  ;;  %v255_v10 = vld [vmem:[#allocation1 + $0x9] sm:$0xff] }
  0x41   :  { %v258_v12 = vsel %vm63_vm0, %v254_v8, 0.0  ;;  %v265_v13 = vsel %vm63_vm0, %v255_v10, 0.0  ;;  %290 = vst [vmem:[#allocation1] ss:$9 sm:$0xff] %v282_v60 }
  0x42   :  { %v259_v15 = vrot.slane %v258_v12, 4  ;;  %v266_v16 = vrot.slane %v265_v13, 4  ;;  %292 = vst [vmem:[#allocation1 + $0x1] ss:$9 sm:$0xff] %v283_v0 }
  0x43   :  { %v446_v60 = vld [vmem:[%s797_s1 + $0x3] ss:$8 sm:$0x3]  ;;  %v447_v0 = vld [vmem:[%s797_s1 + $0x13] ss:$8 sm:$0x3] }
  0x44   :  { %v260_v1 = vadd.f32 %v259_v15, %v258_v12  ;;  %v267_v3 = vadd.f32 %v266_v16, %v265_v13  ;;  %s532_s1 = smov [#allocation4]  }
  0x45   :  { %s403_s14 = sshll.u32 %s532_s1, 4  ;;  %s404_s14 = int_to_ptr.vmem [resolvable:$true] %s403_s14 }
  0x46   :  { %v261_v5 = vrot.slane %v260_v1, 2  ;;  %v268_v18 = vrot.slane %v267_v3, 2 }
  0x48   :  { %v262_v22 = vadd.f32 %v261_v5, %v260_v1  ;;  %v269_v23 = vadd.f32 %v268_v18, %v267_v3 }
  0x49   :  { %v293_v20 = vld [vmem:[#allocation1] sm:$0xff]  ;;  %v294_v24 = vld [vmem:[#allocation1 + $0x9] sm:$0xff] }
  0x4a   :  { %v263_v25 = vrot.slane %v262_v22, 1  ;;  %v270_v27 = vrot.slane %v269_v23, 1  ;;  %301 = vst [vmem:[#allocation1] ss:$9 sm:$0xff] %v199_v44 }
  0x4b   :  { %303 = vst [vmem:[#allocation1 + $0x1] ss:$9 sm:$0xff] %v200_v19 }
  0x4c   :  { %v264_v21 = vadd.f32 %v263_v25, %v262_v22  ;;  %v271_v28 = vadd.f32 %v270_v27, %v269_v23 }
  0x4e   :  { %v284_v29 = vsub.f32 0.0, %v264_v21  ;;  %v285_v32 = vsub.f32 0.0, %v271_v28 }
  0x50   :  { %v286_v33 = vperm.slane %v284_v29, 0  ;;  %v287_v34 = vperm.slane %v285_v32, 0 }
  0x52   :  { %v304_v37 = vld [vmem:[#allocation1] sm:$0xff]  ;;  %v305_v38 = vld [vmem:[#allocation1 + $0x9] sm:$0xff]  ;;  %v297_v31 = vmul.f32 %v293_v20, %v286_v33  ;;  %v298_v39 = vmul.f32 %v294_v24, %v287_v34 }
  0x53   :  { %314 = vst [vmem:[#allocation1] ss:$9 sm:$0xff] %v310_v35 }
  0x54   :  { %316 = vst [vmem:[#allocation1 + $0x1] ss:$9 sm:$0xff] %v441_v26  ;;  %v308_v40 = vmul.f32 %v304_v37, %v297_v31  ;;  %v309_v41 = vmul.f32 %v305_v38, %v298_v39 }
  0x5b   :  { %v317_v49 = vld [vmem:[#allocation1] sm:$0xff]  ;;  %v318_v47 = vld [vmem:[#allocation1 + $0x9] sm:$0xff] }
  0x5c   :  { %v321_v36 = vmul.f32 %v317_v49, %v308_v40  ;;  %v322_v52 = vmul.f32 %v318_v47, %v309_v41  ;;  %332 = vst [vmem:[#allocation1] ss:$9 sm:$0xff] %v442_v46 }
  0x5d   :  { %334 = vst [vmem:[#allocation1 + $0x1] ss:$9 sm:$0xff] %v443_v48 }
  0x5e   :  { %v323_v54 = vsel %vm63_vm0, %v321_v36, 0.0  ;;  %v324_v55 = vsel %vm63_vm0, %v322_v52, 0.0 }
  0x5f   :  { %v325_v56 = vadd.f32 %v324_v55, %v323_v54 }
  0x61   :  { %326 = vadd.xlane.f32.xlu1 %v325_v56 }
  0x64   :  { %v335_v50 = vld [vmem:[#allocation1] sm:$0xff]  ;;  %v336_v62 = vld [vmem:[#allocation1 + $0x9] sm:$0xff] }
  0x65   :  { %v339_v4 = vmul.f32 %v335_v50, %v308_v40  ;;  %v340_v6 = vmul.f32 %v336_v62, %v309_v41  ;;  %350 = vst [vmem:[#allocation1] ss:$9 sm:$0xff] %v444_v59 }
  0x66   :  { %352 = vst [vmem:[#allocation1 + $0x1] ss:$9 sm:$0xff] %v445_v61 }
  0x67   :  { %v341_v42 = vsel %vm63_vm0, %v339_v4, 0.0  ;;  %v342_v7 = vsel %vm63_vm0, %v340_v6, 0.0 }
  0x68   :  { %v343_v45 = vadd.f32 %v342_v7, %v341_v42 }
  0x69   :  { %181 = vadd.xlane.f32.xlu1 %v180_v63 }
  0x6a   :  { %344 = vadd.xlane.f32.xlu2 %v343_v45 }
  0x6d   :  { %v353_v8 = vld [vmem:[#allocation1] sm:$0xff]  ;;  %v354_v10 = vld [vmem:[#allocation1 + $0x9] sm:$0xff] }
  0x6e   :  { %v357_v9 = vmul.f32 %v353_v8, %v308_v40  ;;  %v358_v11 = vmul.f32 %v354_v10, %v309_v41  ;;  %368 = vst [vmem:[#allocation1] ss:$9 sm:$0xff] %v446_v60 }
  0x6f   :  { %370 = vst [vmem:[#allocation1 + $0x1] ss:$9 sm:$0xff] %v447_v0 }
  0x70   :  { %v359_v12 = vsel %vm63_vm0, %v357_v9, 0.0  ;;  %v360_v13 = vsel %vm63_vm0, %v358_v11, 0.0 }
  0x71   :  { %v361_v14 = vadd.f32 %v360_v13, %v359_v12 }
  0x73   :  { %362 = vadd.xlane.f32.xlu0 %v361_v14 }
  0x76   :  { %v371_v2 = vld [vmem:[#allocation1] sm:$0xff]  ;;  %v372_v15 = vld [vmem:[#allocation1 + $0x9] sm:$0xff] }
  0x77   :  { %v375_v16 = vmul.f32 %v371_v2, %v308_v40  ;;  %v376_v17 = vmul.f32 %v372_v15, %v309_v41 }
  0x79   :  { %v377_v43 = vsel %vm63_vm0, %v375_v16, 0.0  ;;  %v378_v1 = vsel %vm63_vm0, %v376_v17, 0.0  ;;  %vm215_vm0 = vcmask 1024  }
  0x7a   :  { %v379_v3 = vadd.f32 %v378_v1, %v377_v43 }
  0x7b   :  { %213 = vadd.xlane.f32.xlu0 %v212_v53 }
  0x7c   :  { %380 = vadd.xlane.f32.xlu2 %v379_v3 }
  0x81   :  { %v68_v44 = vpop.xlane.xlu0 %67 }
  0x93   :  { %v132_v5 = vpop.xlane.xlu1 %131 }
  0x9c   :  { %v164_v23 = vpop.xlane.xlu2 %163 }
  0x9d   :  { %v100_v18 = vpop.xlane.xlu0 %99 }
  0x9e   :  { %v184_v22 = vsel %vm183_vm11, %v68_v44, %v100_v18 }
  0x9f   :  { %v186_v20 = vsel %vm185_vm12, %v184_v22, %v132_v5 }
  0xa0   :  { %v188_v24 = vsel %vm187_vm13, %v186_v20, %v164_v23 }
  0xd4   :  { %v327_v19 = vpop.xlane.xlu1 %326 }
  0xdc   :  { %v182_v25 = vpop.xlane.xlu1 %181 }
  0xdd   :  { %v190_v27 = vsel %vm189_vm14, %v188_v24, %v182_v25  ;;  %v345_v21 = vpop.xlane.xlu2 %344 }
  0xde   :  { %192 = vst.msk [vmem:[#allocation4] sm:$0x3] %vm191_vm15, %v190_v27  ;;  %v382_v29 = vsel %vm183_vm11, %v327_v19, %v345_v21 }
  0xdf   :  { %408 = dma.vmem_to_hbm [thread:$0]  %s404_s14, 32, %s406_s0, [#allocation5]  }
  0xe6   :  { %v363_v28 = vpop.xlane.xlu0 %362 }
  0xe7   :  { %v383_v33 = vsel %vm185_vm12, %v382_v29, %v363_v28 }
  0xee   :  { %v214_v32 = vpop.xlane.xlu0 %213 }
  0xef   :  { %v381_v34 = vpop.xlane.xlu2 %380  ;;  %216 = vst.msk [vmem:[%s800_s4] sm:$0x3] %vm215_vm0, %v214_v32 }
  0xf0   :  { %v384_v35 = vsel %vm187_vm13, %v383_v33, %v381_v34 }
  0xf1   :  { %386 = vst.msk [vmem:[#allocation2] sm:$0x3] %vm385_vm1, %v384_v35 }
  0xf2   :  { %397 = dma.vmem_to_hbm [thread:$0]  %s393_s18, 32, %s395_s3, [#allocation3]  }
  0xf3   :  { %527 = dma.done.wait [#allocation3], 32  }
  0xf4   :  { %528 = vsyncadd [#allocation3], 4294967264 }
  0xf5   :  { %529 = dma.done.wait [#allocation5], 32  }
  0xf6   :  { %530 = vsyncadd [#allocation5], 4294967264 }
  0xf7   :  { %421 = vsyncpa [#allocation3], 1 }
  0xf8   :  { %422 = vsyncpa [#allocation5], 1 }

</bundles_post_ra>
